<compile_context>
chip_gen: v5e
topology: v5e:2x2
jax: 0.10.0
libtpu: 0.0.40
codegen_flags: <defaults>
</compile_context>

<pallas_src>
import functools

import jax
import jax.numpy as jnp
from jax.experimental import pallas as pl
from jax.experimental.pallas import tpu as pltpu

OUT = 2        # decoder output dim (treat / no-treat logits)
LANE = 128     # pad the tiny head output to a full vreg lane width


def _pivot_head_kernel(m_ref, x_ref, w_ref, b_ref, o_ref, acc_ref, len_ref):
    """One (B-tile, S-tile) grid step.

    m_ref  : (TB, TS, 1) f32  mask (reshaped in wrapper -> no XLU relayout)
    x_ref  : (TB, TS, H) f32  sequence_output tile
    w_ref  : (H, 128)    f32  lane-padded decoder weight (cols >= 2 are zero)
    b_ref  : (1, 128)    f32  lane-padded decoder bias
    o_ref  : (TB, 128)   f32  lane-dense padded logits (wrapper slices [:, :2])
    acc_ref: (TB, H)     f32  running masked sum over S   (scratch)
    len_ref: (TB, 1)     f32  running mask length over S  (scratch)
    """
    si = pl.program_id(1)

    @pl.when(si == 0)
    def _init():
        acc_ref[...] = jnp.zeros_like(acc_ref)
        len_ref[...] = jnp.zeros_like(len_ref)

    # GradReverseLayerFunction is identity in the forward pass: pool x directly.
    m = m_ref[...]                                        # (TB, TS, 1)
    acc_ref[...] += jnp.sum(x_ref[...] * m, axis=1)       # (TB, H)  sublane reduce
    len_ref[...] += jnp.sum(m, axis=1)                    # (TB, 1)

    @pl.when(si == pl.num_programs(1) - 1)
    def _finalize():
        # sum-then-single-divide: mathematically identical to the reference's
        # per-element divide, only rounding differs (within f32 tolerance).
        # TODO(synk): like the PyTorch original, no guard for an all-padding
        # row (length == 0 -> inf/nan); semantics preserved intentionally.
        pooled = acc_ref[...] / len_ref[...]              # (TB, H)
        o_ref[...] = (
            jnp.dot(pooled, w_ref[...], preferred_element_type=jnp.float32)
            + b_ref[...]
        )


def pad_decoder_params(w, b):
    """Pad the (H, 2) decoder weight / (2,) bias to lane-dense (H, 128)/(1, 128).

    Call ONCE at parameter-init time (hoisted out of the per-forward hot path).
    Extra columns are zero, so padded logits [2:128] are exactly zero and are
    sliced off by the wrapper.
    """
    H = w.shape[0]
    w_pad = jnp.zeros((H, LANE), jnp.float32).at[:, :OUT].set(w.astype(jnp.float32))
    b_pad = jnp.zeros((1, LANE), jnp.float32).at[:, :OUT].set(
        b.astype(jnp.float32).reshape(1, OUT))
    return w_pad, b_pad


@functools.partial(jax.jit, static_argnames=("tb", "ts"))
def pivot_head_forward(sequence_output, sequence_mask, w_pad, b_pad, *,
                       tb=None, ts=None):
    """sequence_output: (B, S, H) f32; sequence_mask: (B, S);
    w_pad: (H, 128) f32; b_pad: (1, 128) f32  (pre-padded by pad_decoder_params)

    tb / ts: B- and S-tile sizes.  Defaults to the full extent (grid = (1, 1)),
    which is right for the tiny demo shapes.  For production BERT shapes pick
    tb a multiple of 8 and ts in the 512-1024 range (sized to the v7x 64 MiB /
    default 32 MiB scoped VMEM budget) so the S reduction streams.
    """
    B, S, H = sequence_output.shape
    tb = B if tb is None else tb
    ts = S if ts is None else ts
    assert B % tb == 0 and S % ts == 0, "tile sizes must divide (B, S)"

    # (B, S) -> (B, S, 1): metadata-only reshape in the wrapper; inside the
    # kernel the mask then broadcasts along the lane (H) axis with no relayout.
    mask3 = sequence_mask.astype(jnp.float32).reshape(B, S, 1)

    out_padded = pl.pallas_call(
        _pivot_head_kernel,
        out_shape=jax.ShapeDtypeStruct((B, LANE), jnp.float32),
        grid_spec=pltpu.PrefetchScalarGridSpec(
            num_scalar_prefetch=0,
            grid=(B // tb, S // ts),                       # (parallel, arbitrary)
            in_specs=[
                pl.BlockSpec((tb, ts, 1), lambda bi, si: (bi, si, 0)),  # mask
                pl.BlockSpec((tb, ts, H), lambda bi, si: (bi, si, 0)),  # x
                pl.BlockSpec((H, LANE), lambda bi, si: (0, 0)),         # w_pad
                pl.BlockSpec((1, LANE), lambda bi, si: (0, 0)),         # b_pad
            ],
            out_specs=pl.BlockSpec((tb, LANE), lambda bi, si: (bi, 0)),
            scratch_shapes=[
                pltpu.VMEM((tb, H), jnp.float32),   # masked-sum accumulator
                pltpu.VMEM((tb, 1), jnp.float32),   # mask-length accumulator
            ],
        ),
        compiler_params=pltpu.CompilerParams(
            dimension_semantics=("parallel", "arbitrary"),
        ),
    )(mask3, sequence_output.astype(jnp.float32), w_pad, b_pad)

    return out_padded[:, :OUT]


# ---------------- pure-JAX reference (mirrors the PyTorch module) ----------------
def reference_forward(x, mask, w, b):
    m = mask.astype(jnp.float32)
    masked = x * m[:, :, None]
    lengths = jnp.sum(m, axis=-1).reshape(-1, 1, 1)
    pooled = jnp.sum(masked / lengths, axis=1)            # exact PyTorch order
    return pooled @ w + b


if __name__ == "__main__":
    B, S, H = 2, 8, 32   # batch, seq_len, hidden_size (small, module-consistent)

    key = jax.random.PRNGKey(0)
    ks = jax.random.split(key, 3)

    # deterministic synthetic parameters (shapes from the module's __init__)
    w = jax.random.normal(ks[0], (H, OUT), jnp.float32) * 0.02   # decoder weight
    b = jax.random.normal(ks[1], (OUT,), jnp.float32) * 0.02     # decoder bias

    sequence_output = jax.random.normal(ks[2], (B, S, H), jnp.float32)
    # mask: first example has 6 valid tokens, second has 8
    sequence_mask = jnp.array(
        [[1, 1, 1, 1, 1, 1, 0, 0],
         [1, 1, 1, 1, 1, 1, 1, 1]], dtype=jnp.float32)

    # hoisted out of the forward hot path: pad decoder params once at init time
    w_pad, b_pad = pad_decoder_params(w, b)

    out = jax.block_until_ready(
        pivot_head_forward(sequence_output, sequence_mask, w_pad, b_pad))

    out_ref = reference_forward(sequence_output, sequence_mask, w, b)
    assert out.shape == (B, OUT)
    assert jnp.allclose(out, out_ref, atol=1e-5, rtol=1e-5)

    print("KERNEL_OK")
</pallas_src>

<mosaic_0001>
module attributes {stable_mosaic.version = 11 : i64} {
  func.func @_pivot_head_kernel(%arg0: i32, %arg1: i32, %arg2: memref<2x8x1xf32, #tpu.memory_space<vmem>>, %arg3: memref<2x8x32xf32, #tpu.memory_space<vmem>>, %arg4: memref<32x128xf32, #tpu.memory_space<vmem>>, %arg5: memref<1x128xf32, #tpu.memory_space<vmem>>, %arg6: memref<2x128xf32, #tpu.memory_space<vmem>>, %arg7: memref<2x32xf32, #tpu.memory_space<vmem>>, %arg8: memref<2x1xf32, #tpu.memory_space<vmem>>) attributes {dimension_semantics = [#tpu.dimension_semantics<parallel>, #tpu.dimension_semantics<arbitrary>], iteration_bounds = array<i64: 1, 1>, scalar_prefetch = 0 : i64, scratch_operands = 2 : i64, tpu.core_type = #tpu.core_type<tc>, window_params = [{transform_indices = @transform_0, window_bounds = array<i64: 2, 8, 1>}, {transform_indices = @transform_1, window_bounds = array<i64: 2, 8, 32>}, {pipeline_mode = #tpu.pipeline_mode<synchronous>, transform_indices = @transform_2, window_bounds = array<i64: 32, 128>}, {pipeline_mode = #tpu.pipeline_mode<synchronous>, transform_indices = @transform_3, window_bounds = array<i64: 1, 128>}, {transform_indices = @transform_4, window_bounds = array<i64: 2, 128>}]} {
    %c0_i32 = arith.constant 0 : i32
    %0 = arith.cmpi eq, %arg1, %c0_i32 : i32
    %1 = arith.extui %0 : i1 to i32
    %c0_i32_0 = arith.constant 0 : i32
    %2 = arith.cmpi ne, %1, %c0_i32_0 : i32
    scf.if %2 {
      %cst_17 = arith.constant 0.000000e+00 : f32
      %18 = vector.broadcast %cst_17 : f32 to vector<2x32xf32>
      %c0_18 = arith.constant 0 : index
      %c0_19 = arith.constant 0 : index
      %19 = vector.load %arg7[%c0_18, %c0_19] : memref<2x32xf32, #tpu.memory_space<vmem>>, vector<2x32xf32>
      tpu.vector_store %arg7[%c0_18, %c0_19], %18 {strides = array<i32>} : memref<2x32xf32, #tpu.memory_space<vmem>>, vector<2x32xf32>,
      %cst_20 = arith.constant 0.000000e+00 : f32
      %20 = vector.broadcast %cst_20 : f32 to vector<2x1xf32>
      %c0_21 = arith.constant 0 : index
      %c0_22 = arith.constant 0 : index
      %21 = vector.load %arg8[%c0_21, %c0_22] : memref<2x1xf32, #tpu.memory_space<vmem>>, vector<2x1xf32>
      tpu.vector_store %arg8[%c0_21, %c0_22], %20 {strides = array<i32>} : memref<2x1xf32, #tpu.memory_space<vmem>>, vector<2x1xf32>,
    } else {
    }
    %c0 = arith.constant 0 : index
    %c0_1 = arith.constant 0 : index
    %c0_2 = arith.constant 0 : index
    %3 = vector.load %arg2[%c0, %c0_1, %c0_2] : memref<2x8x1xf32, #tpu.memory_space<vmem>>, vector<2x8x1xf32>
    %c0_3 = arith.constant 0 : index
    %c0_4 = arith.constant 0 : index
    %4 = vector.load %arg7[%c0_3, %c0_4] : memref<2x32xf32, #tpu.memory_space<vmem>>, vector<2x32xf32>
    %c0_5 = arith.constant 0 : index
    %c0_6 = arith.constant 0 : index
    %c0_7 = arith.constant 0 : index
    %5 = vector.load %arg3[%c0_5, %c0_6, %c0_7] : memref<2x8x32xf32, #tpu.memory_space<vmem>>, vector<2x8x32xf32>
    %6 = vector.broadcast %3 : vector<2x8x1xf32> to vector<2x8x32xf32>
    %7 = arith.mulf %5, %6 : vector<2x8x32xf32>
    %cst = arith.constant dense<0.000000e+00> : vector<2x32xf32>
    %8 = vector.multi_reduction <add>, %7, %cst [1] : vector<2x8x32xf32> to vector<2x32xf32>
    %9 = arith.addf %4, %8 : vector<2x32xf32>
    %c0_8 = arith.constant 0 : index
    %c0_9 = arith.constant 0 : index
    %10 = vector.load %arg7[%c0_8, %c0_9] : memref<2x32xf32, #tpu.memory_space<vmem>>, vector<2x32xf32>
    tpu.vector_store %arg7[%c0_8, %c0_9], %9 {strides = array<i32>} : memref<2x32xf32, #tpu.memory_space<vmem>>, vector<2x32xf32>,
    %c0_10 = arith.constant 0 : index
    %c0_11 = arith.constant 0 : index
    %11 = vector.load %arg8[%c0_10, %c0_11] : memref<2x1xf32, #tpu.memory_space<vmem>>, vector<2x1xf32>
    %cst_12 = arith.constant dense<0.000000e+00> : vector<2x1xf32>
    %12 = vector.multi_reduction <add>, %3, %cst_12 [1] : vector<2x8x1xf32> to vector<2x1xf32>
    %13 = arith.addf %11, %12 : vector<2x1xf32>
    %c0_13 = arith.constant 0 : index
    %c0_14 = arith.constant 0 : index
    %14 = vector.load %arg8[%c0_13, %c0_14] : memref<2x1xf32, #tpu.memory_space<vmem>>, vector<2x1xf32>
    tpu.vector_store %arg8[%c0_13, %c0_14], %13 {strides = array<i32>} : memref<2x1xf32, #tpu.memory_space<vmem>>, vector<2x1xf32>,
    %c0_i32_15 = arith.constant 0 : i32
    %15 = arith.cmpi eq, %arg1, %c0_i32_15 : i32
    %16 = arith.extui %15 : i1 to i32
    %c0_i32_16 = arith.constant 0 : i32
    %17 = arith.cmpi ne, %16, %c0_i32_16 : i32
    scf.if %17 {
      %c0_17 = arith.constant 0 : index
      %c0_18 = arith.constant 0 : index
      %18 = vector.load %arg7[%c0_17, %c0_18] : memref<2x32xf32, #tpu.memory_space<vmem>>, vector<2x32xf32>
      %c0_19 = arith.constant 0 : index
      %c0_20 = arith.constant 0 : index
      %19 = vector.load %arg8[%c0_19, %c0_20] : memref<2x1xf32, #tpu.memory_space<vmem>>, vector<2x1xf32>
      %20 = vector.broadcast %19 : vector<2x1xf32> to vector<2x32xf32>
      %21 = arith.divf %18, %20 : vector<2x32xf32>
      %c0_21 = arith.constant 0 : index
      %c0_22 = arith.constant 0 : index
      %22 = vector.load %arg4[%c0_21, %c0_22] : memref<32x128xf32, #tpu.memory_space<vmem>>, vector<32x128xf32>
      %cst_23 = arith.constant dense<0.000000e+00> : vector<2x128xf32>
      %23 = tpu.matmul %21, %22, %cst_23 {dimension_numbers = #tpu.dot_dimension_numbers<[1], [0], [0], [1], [0, 0, 1, 1], [], []>} : vector<2x32xf32>, vector<32x128xf32>, vector<2x128xf32> -> vector<2x128xf32>
      %c0_24 = arith.constant 0 : index
      %c0_25 = arith.constant 0 : index
      %24 = vector.load %arg5[%c0_24, %c0_25] : memref<1x128xf32, #tpu.memory_space<vmem>>, vector<1x128xf32>
      %25 = vector.broadcast %24 : vector<1x128xf32> to vector<2x128xf32>
      %26 = arith.addf %23, %25 : vector<2x128xf32>
      %c0_26 = arith.constant 0 : index
      %c0_27 = arith.constant 0 : index
      %27 = vector.load %arg6[%c0_26, %c0_27] : memref<2x128xf32, #tpu.memory_space<vmem>>, vector<2x128xf32>
      tpu.vector_store %arg6[%c0_26, %c0_27], %26 {strides = array<i32>} : memref<2x128xf32, #tpu.memory_space<vmem>>, vector<2x128xf32>,
    } else {
    }
    return
  }
  func.func @transform_0(%arg0: i32, %arg1: i32) -> (i32, i32, i32) {
    %c0_i32 = arith.constant 0 : i32
    %c0_i32_0 = arith.constant 0 : i32
    return %arg0, %arg1, %c0_i32 : i32, i32, i32
  }
  func.func @transform_1(%arg0: i32, %arg1: i32) -> (i32, i32, i32) {
    %c0_i32 = arith.constant 0 : i32
    %c0_i32_0 = arith.constant 0 : i32
    return %arg0, %arg1, %c0_i32 : i32, i32, i32
  }
  func.func @transform_2(%arg0: i32, %arg1: i32) -> (i32, i32) {
    %c0_i32 = arith.constant 0 : i32
    %c0_i32_0 = arith.constant 0 : i32
    %c0_i32_1 = arith.constant 0 : i32
    return %c0_i32, %c0_i32_0 : i32, i32
  }
  func.func @transform_3(%arg0: i32, %arg1: i32) -> (i32, i32) {
    %c0_i32 = arith.constant 0 : i32
    %c0_i32_0 = arith.constant 0 : i32
    %c0_i32_1 = arith.constant 0 : i32
    return %c0_i32, %c0_i32_0 : i32, i32
  }
  func.func @transform_4(%arg0: i32, %arg1: i32) -> (i32, i32) {
    %c0_i32 = arith.constant 0 : i32
    %c0_i32_0 = arith.constant 0 : i32
    return %arg0, %c0_i32 : i32, i32
  }
}

</mosaic_0001>

<bundles_post_ra>
// kernel: pivot_head_forward.1
= control target key start
LH: loop header
LB: loop body
LE: loop exit
PB: predicated region body
PF: predicated region fallthrough
CT: control target
= control target key end

     0   :  { %9 = vsyncpa [#allocation5], 0  ;;  %s304_s0 = inlined_call_operand.vmem [shape: f32[2,8,1], index: 0, kind: input, shape index: {}]   ;;  %s305_s1 = inlined_call_operand.vmem [shape: f32[2,8,32], index: 1, kind: input, shape index: {}]   ;;  %s306_s2 = inlined_call_operand.hbm [shape: f32[32,128], index: 2, kind: input, shape index: {}]   ;;  %s307_s3 = inlined_call_operand.vmem [shape: f32[1,128], index: 3, kind: input, shape index: {}]   ;;  %s308_s4 = inlined_call_operand.hbm [shape: f32[2,128], index: 4, kind: output, shape index: {}]  }
   0x1   :  { %10 = vsyncpa [#allocation6], 0  ;;  %s19_s17 = sshll.u32 %s306_s2, 4  ;;  %s243_s18 = smov [#allocation4]   ;;  %s20_s17 = int_to_ptr.hbm [resolvable:$true] %s19_s17 }
   0x2   :  { %s21_s19 = sshll.u32 %s243_s18, 4  ;;  %s244_s20 = smov 128   ;;  %s22_s19 = int_to_ptr.vmem [resolvable:$true] %s21_s19 }
   0x3   :  { %s245_s21 = smov 8  }
   0x4   :  { %27 = dma.hbm_to_vmem [thread:$0]  %s20_s17, 512, %s22_s19, [#allocation5], %s244_s20, %s244_s20, %s245_s21  }
   0x5   :  { %239 = dma.done.wait [#allocation5], 512  }
   0x6   :  { %240 = vsyncadd [#allocation5], 4294966784  ;;  %vm40_vm0 = vcmask 1024   ;;  %v246_v0 = vmov 0   ;;  %v247_v1 = vmov 0.0   ;;  %vm83_vm1 = vcmask 7168  }
   0x7   :  { %186 = vset.pattern.permute.xlu0 %v246_v0  ;;  %41 = vst.msk [vmem:[#allocation3] sm:$0x3] %vm40_vm0, %v247_v1  ;;  %187 = vset.pattern.permute.xlu1 %v246_v0  ;;  %v42_v2 = vld [vmem:[%s304_s0] sm:$0xff]  ;;  %v43_v3 = vld [vmem:[%s304_s0 + $0x8] sm:$0xff]  ;;  %vm76_vm2 = vcmask 1041409   ;;  %vm38_vm3 = vcmask 254976  }
   0x8   :  { %49 = vperm.xlu0 %186, %v42_v2   ;;  %v84_v4 = vsel %vm83_vm1, %v42_v2, 0.0  ;;  %v91_v5 = vsel %vm83_vm1, %v43_v3, 0.0  ;;  %39 = vst.msk [vmem:[#allocation2] sm:$0x3] %vm38_vm3, %v247_v1  ;;  %v45_v22 = vld [vmem:[%s305_s1] sm:$0xff]  ;;  %vm59_vm4 = vcmask 261120  }
   0x9   :  { %v85_v6 = vrot.slane %v84_v4, 4  ;;  %v92_v7 = vrot.slane %v91_v5, 4  ;;  %v133_v26 = vld [vmem:[#allocation4 + $0x18] sm:$0xff]  ;;  %v46_v28 = vld [vmem:[%s305_s1 + $0x8] sm:$0xff]  ;;  %v132_v29 = vld [vmem:[#allocation4 + $0x10] sm:$0xff]  ;;  %s248_s29 = smov [#allocation7]  }
   0xa   :  { %153 = vmatpush.msra.mxu0 %v133_v26  ;;  %v131_v30 = vld [vmem:[#allocation4 + $0x8] sm:$0xff]  ;;  %v130_v33 = vld [vmem:[#allocation4] sm:$0xff]  ;;  %v188_v62 = vld [vmem:[%s307_s3] ss:$0 sm:$0xff]  ;;  %s167_s30 = sshll.u32 %s248_s29, 4  ;;  %s169_s7 = sshll.u32 %s308_s4, 4  ;;  %s168_s30 = int_to_ptr.vmem [resolvable:$true] %s167_s30  ;;  %s170_s7 = int_to_ptr.hbm [resolvable:$true] %s169_s7 }
   0xb   :  { %v86_v8 = vadd.f32 %v85_v6, %v84_v4  ;;  %v93_v9 = vadd.f32 %v92_v7, %v91_v5 }
   0xc   :  { %154 = vmatpush.msra.mxu0 %v132_v29 }
   0xd   :  { %v87_v10 = vrot.slane %v86_v8, 2  ;;  %v94_v11 = vrot.slane %v93_v9, 2 }
   0xe   :  { %v82_v18 = vld [vmem:[#allocation3] sm:$0x3]  ;;  %155 = vmatpush.msra.mxu0 %v131_v30 }
   0xf   :  { %v88_v12 = vadd.f32 %v87_v10, %v86_v8  ;;  %v95_v13 = vadd.f32 %v94_v11, %v93_v9  ;;  %v44_v46 = vld [vmem:[#allocation2] sm:$0x3] }
  0x10   :  { %54 = vperm.xlu0 %186, %v43_v3   ;;  %156 = vmatpush.msra.mxu0 %v130_v33 }
  0x11   :  { %v89_v14 = vrot.slane %v88_v12, 1  ;;  %v96_v15 = vrot.slane %v95_v13, 1 }
  0x13   :  { %v90_v16 = vadd.f32 %v89_v14, %v88_v12  ;;  %v97_v17 = vadd.f32 %v96_v15, %v95_v13 }
  0x15   :  { %v100_v19 = vsel %vm76_vm2, %v97_v17, %v90_v16 }
  0x16   :  { %v102_v20 = vadd.f32 %v100_v19, %v82_v18 }
  0x18   :  { %104 = vst.msk [vmem:[#allocation3] sm:$0x3] %vm40_vm0, %v102_v20 }
  0x1f   :  { %v109_v21 = vld [vmem:[#allocation3] sm:$0x3] }
  0x20   :  { %112 = vperm.xlu1 %187, %v109_v21  }
  0x7a   :  { %v50_v23 = vpop.permute.xlu0 %49 }
  0x7b   :  { %v57_v24 = vmul.f32 %v50_v23, %v45_v22 }
  0x7d   :  { %v60_v25 = vsel %vm59_vm4, %v57_v24, 0.0 }
  0x7e   :  { %v61_v27 = vrot.slane %v60_v25, 4 }
  0x80   :  { %v62_v31 = vadd.f32 %v61_v27, %v60_v25 }
  0x82   :  { %v55_v32 = vpop.permute.xlu0 %54  ;;  %v63_v35 = vrot.slane %v62_v31, 2 }
  0x83   :  { %v58_v34 = vmul.f32 %v55_v32, %v46_v28 }
  0x84   :  { %v64_v38 = vadd.f32 %v63_v35, %v62_v31 }
  0x85   :  { %v67_v36 = vsel %vm59_vm4, %v58_v34, 0.0 }
  0x86   :  { %v68_v37 = vrot.slane %v67_v36, 4  ;;  %v65_v41 = vrot.slane %v64_v38, 1 }
  0x88   :  { %v69_v39 = vadd.f32 %v68_v37, %v67_v36  ;;  %v66_v44 = vadd.f32 %v65_v41, %v64_v38 }
  0x8a   :  { %v70_v40 = vrot.slane %v69_v39, 2 }
  0x8c   :  { %v71_v42 = vadd.f32 %v70_v40, %v69_v39 }
  0x8e   :  { %v72_v43 = vrot.slane %v71_v42, 1 }
  0x90   :  { %v73_v45 = vadd.f32 %v72_v43, %v71_v42 }
  0x92   :  { %v113_v47 = vpop.permute.xlu1 %112  ;;  %v77_v48 = vsel %vm76_vm2, %v73_v45, %v66_v44 }
  0x93   :  { %189 = vrcp.f32 %v113_v47  ;;  %v79_v49 = vadd.f32 %v77_v48, %v44_v46  ;;  %v126_v53 = vand.u32 2147483648, %v113_v47  ;;  %v124_v55 = vand.u32 2147483647, %v113_v47 }
  0x94   :  { %vm120_vm6 = vweird.f32 %v113_v47 }
  0x95   :  { %81 = vst.msk [vmem:[#allocation2] sm:$0x3] %vm38_vm3, %v79_v49  ;;  %v127_v57 = vor.u32 1.1754944e-38, %v126_v53  ;;  %vm125_vm8 = vcmp.eq.f32.partialorder %v124_v55, 8.507059e+37 }
  0x99   :  { %v190_v50 = vpop.eup %189 }
  0x9a   :  { %v116_v51 = vmul.f32 %v190_v50, %v113_v47  ;;  %vm121_vm5 = vweird.f32 %v190_v50 }
  0x9b   :  { %vm122_vm7 = vmor %vm120_vm6, %vm121_vm5 }
  0x9c   :  { %v117_v52 = vsub.f32 1.0, %v116_v51  ;;  %v108_v59 = vld [vmem:[#allocation2] sm:$0x3] }
  0x9e   :  { %v118_v54 = vmul.f32 %v190_v50, %v117_v52 }
  0xa0   :  { %v119_v56 = vadd.f32 %v190_v50, %v118_v54 }
  0xa2   :  { %v123_v58 = vsel %vm122_vm7, %v190_v50, %v119_v56 }
  0xa3   :  { %v128_v60 = vsel %vm125_vm8, %v127_v57, %v123_v58 }
  0xa4   :  { %v129_v61 = vmul.f32 %v128_v60, %v108_v59 }
  0xa6   :  { %179 = vmatmul.msk.f32.vlgmr.msra.gmra.mxu0 %vm59_vm4, %v129_v61 }
 0x123   :  { %v158_v63 = vpop.f32.mrf.mxu0 }
 0x124   :  { %v159_v0 = vadd.f32 %v188_v62, %v158_v63 }
 0x126   :  { %161 = vst [vmem:[#allocation7] sm:$0x3] %v159_v0 }
 0x127   :  { %172 = dma.vmem_to_hbm [thread:$0]  %s168_s30, 32, %s170_s7, [#allocation6]  }
 0x128   :  { %241 = dma.done.wait [#allocation6], 32  }
 0x129   :  { %242 = vsyncadd [#allocation6], 4294967264 }
 0x12a   :  { %177 = vsyncpa [#allocation5], 1 }
 0x12b   :  { %178 = vsyncpa [#allocation6], 1 }

</bundles_post_ra>
